<compile_context>
chip_gen: v7x
topology: tpu7x:2x2x1
jax: 0.10.0
libtpu: 0.0.40
codegen_flags: <defaults>
</compile_context>

<pallas_src>
import jax
import jax.numpy as jnp
from jax.experimental import pallas as pl
from jax.experimental.pallas import tpu as pltpu


# ---------------------------------------------------------------------------
# Parameter glue (cheap, one-time; done in plain JAX)
# ---------------------------------------------------------------------------
def khatri_rao_B(B1, B2):
    # (d_out, r1), (d_out, r2) -> (d_out, r1*r2)
    d_out, r1 = B1.shape
    _, r2 = B2.shape
    return (B1[:, :, None] * B2[:, None, :]).reshape(d_out, r1 * r2)


def khatri_rao_A(A1, A2):
    # (r1, d_in), (r2, d_in) -> (r1*r2, d_in)
    r1, d_in = A1.shape
    r2, _ = A2.shape
    return (A1[:, None, :] * A2[None, :, :]).reshape(r1 * r2, d_in)


# ---------------------------------------------------------------------------
# Pallas kernel
# ---------------------------------------------------------------------------
def _abba_kernel(x_ref, w0t_ref, s_ref, bst_ref, bias_ref, o_ref, acc_ref):
    """One (tm, tn) output tile; K-reduction on grid axis 2.

    x_ref:    (tm, tk)  activations (bf16)
    w0t_ref:  (tk, tn)  W0.T tile   (bf16, contraction on leading dim)
    s_ref:    (tm, R)   precomputed adapter projection x @ A_star.T (bf16)
    bst_ref:  (R, tn)   B_star.T    (bf16)
    bias_ref: (1, tn)   bias row    (f32)
    o_ref:    (tm, tn)  output
    acc_ref:  (tm, tn)  f32 accumulator (initialized with bias at k==0)
    """
    k = pl.program_id(2)

    @pl.when(k == 0)
    def _init():
        # Fold bias into the accumulator init; sublane broadcast of (1, tn).
        acc_ref[...] = jnp.broadcast_to(bias_ref[...], acc_ref.shape)

    acc_ref[...] += jnp.dot(x_ref[...], w0t_ref[...],
                            preferred_element_type=jnp.float32)

    @pl.when(k == pl.num_programs(2) - 1)
    def _finalize():
        # Adapter expansion: tiny (tm, R) x (R, tn) dot, once per output tile.
        y = acc_ref[...] + jnp.dot(s_ref[...], bst_ref[...],
                                   preferred_element_type=jnp.float32)
        o_ref[...] = y.astype(o_ref.dtype)


# ---------------------------------------------------------------------------
# Wrapper
# ---------------------------------------------------------------------------
def _round_up(x, m):
    return (x + m - 1) // m * m


def _pick_tile(dim, target, align=128):
    """Largest multiple of `align` that divides `dim` and is <= target."""
    t = max(align, (min(target, dim) // align) * align)
    while dim % t:
        t -= align
    return t


def abba_forward(x, W0, bias, A1, B1, A2, B2, alpha1, alpha2, *,
                 compute_dtype=jnp.bfloat16,
                 out_dtype=None,
                 tm_target=512, tn_target=512, tk_target=1024):
    out_features, in_features = W0.shape
    if in_features % 128 or out_features % 128:
        raise ValueError("in_features and out_features must be multiples of 128")
    out_dtype = x.dtype if out_dtype is None else out_dtype

    # _rebuild_factors (parameter setup / glue)
    s1 = jnp.sqrt(jnp.asarray(alpha1, dtype=W0.dtype))
    s2 = jnp.sqrt(jnp.asarray(alpha2, dtype=W0.dtype))
    B_star = khatri_rao_B(B1 * s1, B2 * s2)        # (N, R)
    A_star = khatri_rao_A(A1, A2)                  # (R, K)
    R = A_star.shape[0]

    # One-time pre-transpose to MXU-native RHS layout + bf16 compute dtype.
    W0_t = W0.T.astype(compute_dtype)              # (K, N)
    B_star_t = B_star.T.astype(compute_dtype)      # (R, N)
    bias2d = bias.reshape(1, out_features).astype(jnp.float32)

    orig_shape = x.shape
    x2d = x.reshape(-1, in_features)               # (M, K)
    M = x2d.shape[0]
    K, N = in_features, out_features

    # Precompute the narrow adapter projection once (f32, then bf16 for MXU).
    # Tiny: R/N of the base GEMM FLOPs; removes the per-(j,k) narrow matmul.
    s2d = jnp.dot(x2d.astype(jnp.float32), A_star.T.astype(jnp.float32))  # (M, R)

    # Tile sizes: M rounded up to a sublane multiple; N/K lane-aligned divisors.
    tm = tm_target if M >= tm_target else _round_up(M, 8)
    M_pad = _round_up(M, tm)
    tn = _pick_tile(N, tn_target)
    tk = _pick_tile(K, tk_target)

    x2d_c = x2d.astype(compute_dtype)
    s2d_c = s2d.astype(compute_dtype)
    if M_pad != M:
        x2d_c = jnp.pad(x2d_c, ((0, M_pad - M), (0, 0)))
        s2d_c = jnp.pad(s2d_c, ((0, M_pad - M), (0, 0)))

    gi, gj, gk = M_pad // tm, N // tn, K // tk
    grid = (gi, gj, gk)

    itemsize = jnp.dtype(compute_dtype).itemsize
    out_itemsize = jnp.dtype(out_dtype).itemsize
    cost = pl.CostEstimate(
        flops=2 * M_pad * N * K        # base GEMM
              + 2 * M_pad * N * R,     # adapter expansion, once per output tile
        transcendentals=0,
        bytes_accessed=(
            gj * M_pad * K * itemsize          # x re-read once per j tile
            + gi * K * N * itemsize            # W0.T re-read once per i tile
            + gj * M_pad * R * itemsize        # s re-read once per j tile
            + gi * R * N * itemsize            # B_star.T
            + gi * N * 4                       # bias
            + M_pad * N * out_itemsize         # output writeback
        ),
    )

    out = pl.pallas_call(
        _abba_kernel,
        out_shape=jax.ShapeDtypeStruct((M_pad, N), out_dtype),
        grid_spec=pltpu.PrefetchScalarGridSpec(
            num_scalar_prefetch=0,
            grid=grid,
            in_specs=[
                pl.BlockSpec((tm, tk), lambda i, j, k: (i, k)),   # x
                # If profiling shows exposed DMA at small tm, add
                # pipeline_mode=pl.Buffered(3) on this W0.T spec.
                pl.BlockSpec((tk, tn), lambda i, j, k: (k, j)),   # W0.T
                pl.BlockSpec((tm, R), lambda i, j, k: (i, 0)),    # s = x @ A_star.T
                pl.BlockSpec((R, tn), lambda i, j, k: (0, j)),    # B_star.T
                pl.BlockSpec((1, tn), lambda i, j, k: (0, j)),    # bias
            ],
            out_specs=pl.BlockSpec((tm, tn), lambda i, j, k: (i, j)),
            scratch_shapes=[
                pltpu.VMEM((tm, tn), jnp.float32),  # base-GEMM accumulator
            ],
        ),
        compiler_params=pltpu.CompilerParams(
            dimension_semantics=("parallel", "parallel", "arbitrary"),
            vmem_limit_bytes=48 * 1024 * 1024,  # safe on v5e/v6e/v7x
        ),
        cost_estimate=cost,
    )(x2d_c, W0_t, s2d_c, B_star_t, bias2d)

    if M_pad != M:
        out = out[:M]
    return out.reshape(*orig_shape[:-1], N)


def abba_forward_ref(x, W0, bias, A1, B1, A2, B2, alpha1, alpha2):
    """Pure-JAX f32 reference mirroring the PyTorch forward."""
    s1 = jnp.sqrt(jnp.asarray(alpha1, dtype=W0.dtype))
    s2 = jnp.sqrt(jnp.asarray(alpha2, dtype=W0.dtype))
    B_star = khatri_rao_B(B1 * s1, B2 * s2)
    A_star = khatri_rao_A(A1, A2)
    y = x @ W0.T + bias
    s = x @ A_star.T
    return y + s @ B_star.T


if __name__ == "__main__":
    # Small deterministic shapes consistent with the module.
    batch, seq = 2, 8
    in_features, out_features = 1024, 512
    r1, r2 = 4, 4
    alpha1, alpha2 = 8.0, 8.0

    key = jax.random.PRNGKey(0)
    kx, kw, kb, ka1, kb1, ka2, kb2 = jax.random.split(key, 7)

    x = jax.random.normal(kx, (batch, seq, in_features), dtype=jnp.float32)
    W0 = jax.random.normal(kw, (out_features, in_features), dtype=jnp.float32) * 0.05
    bias = jax.random.normal(kb, (out_features,), dtype=jnp.float32) * 0.1
    # Synthetic deterministic adapter params (module's SVD init is
    # checkpoint-dependent; only the shapes matter for the forward pass).
    A1 = jax.random.normal(ka1, (r1, in_features), dtype=jnp.float32) * 0.05
    B1 = jax.random.normal(kb1, (out_features, r1), dtype=jnp.float32) * 0.05
    A2 = jax.random.normal(ka2, (r2, in_features), dtype=jnp.float32) * 0.05
    B2 = jax.random.normal(kb2, (out_features, r2), dtype=jnp.float32) * 0.05
    # TODO(synk): dropout is identity in eval mode (p=0.0 default), so omitted.

    y_ref = abba_forward_ref(x, W0, bias, A1, B1, A2, B2, alpha1, alpha2)

    # 1) Default (large-tile) configuration: grid collapses to a single step
    #    at these small demo shapes, exercising the fast path.
    y = abba_forward(x, W0, bias, A1, B1, A2, B2, alpha1, alpha2)
    y = jax.block_until_ready(y)
    assert y.shape == (batch, seq, out_features)
    assert jnp.allclose(y, y_ref, atol=5e-2, rtol=5e-2), "mismatch (default tiles)"

    # 2) Small tiles to force a multi-step (i, j, k) grid and exercise the
    #    k==0 init / accumulation / k==last finalize pipeline.
    y2 = abba_forward(x, W0, bias, A1, B1, A2, B2, alpha1, alpha2,
                      tm_target=8, tn_target=256, tk_target=512)
    y2 = jax.block_until_ready(y2)
    assert y2.shape == (batch, seq, out_features)
    assert jnp.allclose(y2, y_ref, atol=5e-2, rtol=5e-2), "mismatch (multi-tile grid)"

    print("KERNEL_OK")
</pallas_src>

<mosaic_0001>
module attributes {stable_mosaic.version = 11 : i64} {
  func.func @_abba_kernel(%arg0: i32, %arg1: i32, %arg2: i32, %arg3: memref<16x1024xbf16, #tpu.memory_space<vmem>>, %arg4: memref<1024x512xbf16, #tpu.memory_space<vmem>>, %arg5: memref<16x16xbf16, #tpu.memory_space<vmem>>, %arg6: memref<16x512xbf16, #tpu.memory_space<vmem>>, %arg7: memref<1x512xf32, #tpu.memory_space<vmem>>, %arg8: memref<16x512xf32, #tpu.memory_space<vmem>>, %arg9: memref<16x512xf32, #tpu.memory_space<vmem>>) attributes {dimension_semantics = [#tpu.dimension_semantics<parallel>, #tpu.dimension_semantics<parallel>, #tpu.dimension_semantics<arbitrary>], iteration_bounds = array<i64: 1, 1, 1>, scalar_prefetch = 0 : i64, scratch_operands = 1 : i64, tpu.core_type = #tpu.core_type<tc>, window_params = [{transform_indices = @transform_0, window_bounds = array<i64: 16, 1024>}, {transform_indices = @transform_1, window_bounds = array<i64: 1024, 512>}, {transform_indices = @transform_2, window_bounds = array<i64: 16, 16>}, {transform_indices = @transform_3, window_bounds = array<i64: 16, 512>}, {transform_indices = @transform_4, window_bounds = array<i64: 1, 512>}, {transform_indices = @transform_5, window_bounds = array<i64: 16, 512>}]} {
    %c0_i32 = arith.constant 0 : i32
    %0 = arith.cmpi eq, %arg2, %c0_i32 : i32
    %1 = arith.extui %0 : i1 to i32
    %c0_i32_0 = arith.constant 0 : i32
    %2 = arith.cmpi ne, %1, %c0_i32_0 : i32
    scf.if %2 {
      %c0_10 = arith.constant 0 : index
      %c0_11 = arith.constant 0 : index
      %12 = vector.load %arg7[%c0_10, %c0_11] : memref<1x512xf32, #tpu.memory_space<vmem>>, vector<1x512xf32>
      %13 = vector.shape_cast %12 : vector<1x512xf32> to vector<1x512xf32>
      %14 = vector.broadcast %13 : vector<1x512xf32> to vector<16x512xf32>
      %c0_12 = arith.constant 0 : index
      %c0_13 = arith.constant 0 : index
      %15 = vector.load %arg9[%c0_12, %c0_13] : memref<16x512xf32, #tpu.memory_space<vmem>>, vector<16x512xf32>
      tpu.vector_store %arg9[%c0_12, %c0_13], %14 {strides = array<i32>} : memref<16x512xf32, #tpu.memory_space<vmem>>, vector<16x512xf32>,
    } else {
    }
    %c0 = arith.constant 0 : index
    %c0_1 = arith.constant 0 : index
    %3 = vector.load %arg9[%c0, %c0_1] : memref<16x512xf32, #tpu.memory_space<vmem>>, vector<16x512xf32>
    %c0_2 = arith.constant 0 : index
    %c0_3 = arith.constant 0 : index
    %4 = vector.load %arg3[%c0_2, %c0_3] : memref<16x1024xbf16, #tpu.memory_space<vmem>>, vector<16x1024xbf16>
    %c0_4 = arith.constant 0 : index
    %c0_5 = arith.constant 0 : index
    %5 = vector.load %arg4[%c0_4, %c0_5] : memref<1024x512xbf16, #tpu.memory_space<vmem>>, vector<1024x512xbf16>
    %cst = arith.constant dense<0.000000e+00> : vector<16x512xf32>
    %6 = tpu.matmul %4, %5, %cst {dimension_numbers = #tpu.dot_dimension_numbers<[1], [0], [0], [1], [0, 0, 1, 1], [], []>} : vector<16x1024xbf16>, vector<1024x512xbf16>, vector<16x512xf32> -> vector<16x512xf32>
    %7 = arith.addf %3, %6 : vector<16x512xf32>
    %c0_6 = arith.constant 0 : index
    %c0_7 = arith.constant 0 : index
    %8 = vector.load %arg9[%c0_6, %c0_7] : memref<16x512xf32, #tpu.memory_space<vmem>>, vector<16x512xf32>
    tpu.vector_store %arg9[%c0_6, %c0_7], %7 {strides = array<i32>} : memref<16x512xf32, #tpu.memory_space<vmem>>, vector<16x512xf32>,
    %c0_i32_8 = arith.constant 0 : i32
    %9 = arith.cmpi eq, %arg2, %c0_i32_8 : i32
    %10 = arith.extui %9 : i1 to i32
    %c0_i32_9 = arith.constant 0 : i32
    %11 = arith.cmpi ne, %10, %c0_i32_9 : i32
    scf.if %11 {
      %c0_10 = arith.constant 0 : index
      %c0_11 = arith.constant 0 : index
      %12 = vector.load %arg9[%c0_10, %c0_11] : memref<16x512xf32, #tpu.memory_space<vmem>>, vector<16x512xf32>
      %c0_12 = arith.constant 0 : index
      %c0_13 = arith.constant 0 : index
      %13 = vector.load %arg5[%c0_12, %c0_13] : memref<16x16xbf16, #tpu.memory_space<vmem>>, vector<16x16xbf16>
      %c0_14 = arith.constant 0 : index
      %c0_15 = arith.constant 0 : index
      %14 = vector.load %arg6[%c0_14, %c0_15] : memref<16x512xbf16, #tpu.memory_space<vmem>>, vector<16x512xbf16>
      %cst_16 = arith.constant dense<0.000000e+00> : vector<16x512xf32>
      %15 = tpu.matmul %13, %14, %cst_16 {dimension_numbers = #tpu.dot_dimension_numbers<[1], [0], [0], [1], [0, 0, 1, 1], [], []>} : vector<16x16xbf16>, vector<16x512xbf16>, vector<16x512xf32> -> vector<16x512xf32>
      %16 = arith.addf %12, %15 : vector<16x512xf32>
      %c0_17 = arith.constant 0 : index
      %c0_18 = arith.constant 0 : index
      %17 = vector.load %arg8[%c0_17, %c0_18] : memref<16x512xf32, #tpu.memory_space<vmem>>, vector<16x512xf32>
      tpu.vector_store %arg8[%c0_17, %c0_18], %16 {strides = array<i32>} : memref<16x512xf32, #tpu.memory_space<vmem>>, vector<16x512xf32>,
    } else {
    }
    return
  }
  func.func @transform_0(%arg0: i32, %arg1: i32, %arg2: i32) -> (i32, i32) {
    %c0_i32 = arith.constant 0 : i32
    return %arg0, %arg2 : i32, i32
  }
  func.func @transform_1(%arg0: i32, %arg1: i32, %arg2: i32) -> (i32, i32) {
    %c0_i32 = arith.constant 0 : i32
    return %arg2, %arg1 : i32, i32
  }
  func.func @transform_2(%arg0: i32, %arg1: i32, %arg2: i32) -> (i32, i32) {
    %c0_i32 = arith.constant 0 : i32
    %c0_i32_0 = arith.constant 0 : i32
    return %arg0, %c0_i32 : i32, i32
  }
  func.func @transform_3(%arg0: i32, %arg1: i32, %arg2: i32) -> (i32, i32) {
    %c0_i32 = arith.constant 0 : i32
    %c0_i32_0 = arith.constant 0 : i32
    return %c0_i32, %arg1 : i32, i32
  }
  func.func @transform_4(%arg0: i32, %arg1: i32, %arg2: i32) -> (i32, i32) {
    %c0_i32 = arith.constant 0 : i32
    %c0_i32_0 = arith.constant 0 : i32
    return %c0_i32, %arg1 : i32, i32
  }
  func.func @transform_5(%arg0: i32, %arg1: i32, %arg2: i32) -> (i32, i32) {
    %c0_i32 = arith.constant 0 : i32
    return %arg0, %arg1 : i32, i32
  }
}

</mosaic_0001>

<bundles_post_ra>
// kernel: tpu_custom_call.1
= control target key start
LH: loop header
LB: loop body
LE: loop exit
PB: predicated region body
PF: predicated region fallthrough
CT: control target
= control target key end

     0   :  { %10 = vsyncpa [#allocation4], 0  ;;  %s3203_s0 = inlined_call_operand.hbm [shape: bf16[16,1024], index: 0, kind: input, shape index: {}]   ;;  %s3204_s1 = inlined_call_operand.hbm [shape: bf16[1024,512], index: 1, kind: input, shape index: {}]   ;;  %s3205_s2 = inlined_call_operand.hbm [shape: bf16[16,16], index: 2, kind: input, shape index: {}]   ;;  %s3206_s3 = inlined_call_operand.hbm [shape: bf16[16,512], index: 3, kind: input, shape index: {}]   ;;  %s3207_s4 = inlined_call_operand.vmem [shape: f32[1,512], index: 4, kind: input, shape index: {}]   ;;  %s3208_s5 = inlined_call_operand.hbm [shape: f32[16,512], index: 5, kind: output, shape index: {}]  }
   0x1   :  { %11 = vsyncpa [#allocation7], 0 }
   0x2   :  { %12 = vsyncpa [#allocation10], 0 }
   0x3   :  { %13 = vsyncpa [#allocation5], 0  ;;  %s3062_s18 = smov [#allocation6]   ;;  %s2944_s22 = scalar_lea.hbm %s3204_s1, 32768 }
   0x4   :  { %s31_s19 = sshll.u32 %s3062_s18, 4  ;;  %p2945_p0 = scmp.ne.s32.totalorder %s3204_s1, %s2944_s22  ;;  %s32_s19 = int_to_ptr.vmem [resolvable:$true] %s31_s19 }
   0x5   :  { %p2948_p1 = scmp.lt.u32.totalorder %s2944_s22, %s3204_s1 }
   0x7   :  { %p2950_p2 = pnand %p2948_p1, %p2945_p0 }
   0x9   :  { %2953 = shalt.err (!%p2950_p2)
}
   0xa   :  { %s2954_s27 = scalar_lea.vmem %s32_s19, 32768  ;;  %p2959_p4 = scmp.lt.s32.totalorder %s32_s19, %s32_s19 }
   0xb   :  { %p2955_p3 = scmp.ne.s32.totalorder %s32_s19, %s2954_s27  ;;  %p2960_p5 = scmp.lt.s32.totalorder %s2954_s27, %s2954_s27 }
   0xd   :  { %p2961_p6 = por %p2960_p5, %p2959_p4 }
   0xf   :  { %p2962_p7 = pnand %p2961_p6, %p2955_p3 }
  0x11   :  { %2965 = shalt.err (!%p2962_p7)
}
  0x12   :  { %s3063_s28 = smov 256   ;;  %s3064_s29 = smov 16  }
  0x13   :  { %37 = dma.hbm_to_vmem [thread:$0]  %s3204_s1, 32768, %s32_s19, [#allocation7], %s3063_s28, %s3063_s28, %s3064_s29  }
  0x14   :  { %s3065_s7 = smov [#allocation3]   ;;  %s2966_s11 = scalar_lea.hbm %s3203_s0, 1024 }
  0x15   :  { %s19_s8 = sshll.u32 %s3065_s7, 4  ;;  %p2967_p8 = scmp.ne.s32.totalorder %s3203_s0, %s2966_s11  ;;  %s20_s8 = int_to_ptr.vmem [resolvable:$true] %s19_s8 }
  0x16   :  { %p2970_p9 = scmp.lt.u32.totalorder %s2966_s11, %s3203_s0 }
  0x18   :  { %p2972_p10 = pnand %p2970_p9, %p2967_p8 }
  0x1a   :  { %2975 = shalt.err (!%p2972_p10)
}
  0x1b   :  { %s2976_s16 = scalar_lea.vmem %s20_s8, 1024  ;;  %p2981_p12 = scmp.lt.s32.totalorder %s20_s8, %s20_s8 }
  0x1c   :  { %p2977_p11 = scmp.ne.s32.totalorder %s20_s8, %s2976_s16  ;;  %p2982_p13 = scmp.lt.s32.totalorder %s2976_s16, %s2976_s16 }
  0x1e   :  { %p2983_p0 = por %p2982_p13, %p2981_p12 }
  0x20   :  { %p2984_p1 = pnand %p2983_p0, %p2977_p11 }
  0x22   :  { %2987 = shalt.err (!%p2984_p1)
}
  0x23   :  { %s3066_s1 = smov 512   ;;  %s3067_s17 = smov 32  }
  0x24   :  { %25 = dma.hbm_to_vmem [thread:$0]  %s3203_s0, 1024, %s20_s8, [#allocation4], %s3066_s1, %s3066_s1, %s3067_s17  }
  0x25   :  { %s3068_s20 = smov [#allocation8]   ;;  %s2988_s24 = scalar_lea.hbm %s3205_s2, 128 }
  0x26   :  { %s43_s21 = sshll.u32 %s3068_s20, 4  ;;  %p2989_p2 = scmp.ne.s32.totalorder %s3205_s2, %s2988_s24  ;;  %s44_s21 = int_to_ptr.vmem [resolvable:$true] %s43_s21 }
  0x27   :  { %p2992_p3 = scmp.lt.u32.totalorder %s2988_s24, %s3205_s2 }
  0x29   :  { %p2994_p4 = pnand %p2992_p3, %p2989_p2 }
  0x2b   :  { %2997 = shalt.err (!%p2994_p4)
}
  0x2c   :  { %s2998_s6 = scalar_lea.vmem %s44_s21, 128  ;;  %p3003_p6 = scmp.lt.s32.totalorder %s44_s21, %s44_s21 }
  0x2d   :  { %p2999_p5 = scmp.ne.s32.totalorder %s44_s21, %s2998_s6  ;;  %p3004_p7 = scmp.lt.s32.totalorder %s2998_s6, %s2998_s6 }
  0x2f   :  { %p3005_p8 = por %p3004_p7, %p3003_p6 }
  0x31   :  { %p3006_p9 = pnand %p3005_p8, %p2999_p5 }
  0x33   :  { %3009 = shalt.err (!%p3006_p9)
}
  0x34   :  { %s3069_s0 = smov 64   ;;  %s3070_s7 = smov 4  }
  0x35   :  { %49 = dma.hbm_to_vmem [thread:$0]  %s3205_s2, 128, %s44_s21, [#allocation7], %s3069_s0, %s3069_s0, %s3070_s7  }
  0x36   :  { %s3071_s10 = smov [#allocation9]   ;;  %s3010_s14 = scalar_lea.hbm %s3206_s3, 512 }
  0x37   :  { %s55_s11 = sshll.u32 %s3071_s10, 4  ;;  %p3011_p10 = scmp.ne.s32.totalorder %s3206_s3, %s3010_s14  ;;  %s56_s11 = int_to_ptr.vmem [resolvable:$true] %s55_s11 }
  0x38   :  { %p3014_p11 = scmp.lt.u32.totalorder %s3010_s14, %s3206_s3 }
  0x3a   :  { %p3016_p12 = pnand %p3014_p11, %p3011_p10 }
  0x3c   :  { %3019 = shalt.err (!%p3016_p12)
}
  0x3d   :  { %s3020_s20 = scalar_lea.vmem %s56_s11, 512  ;;  %p3025_p0 = scmp.lt.s32.totalorder %s56_s11, %s56_s11 }
  0x3e   :  { %p3021_p13 = scmp.ne.s32.totalorder %s56_s11, %s3020_s20  ;;  %p3026_p1 = scmp.lt.s32.totalorder %s3020_s20, %s3020_s20 }
  0x40   :  { %p3027_p2 = por %p3026_p1, %p3025_p0 }
  0x42   :  { %p3028_p3 = pnand %p3027_p2, %p3021_p13 }
  0x44   :  { %3031 = shalt.err (!%p3028_p3)
}
  0x45   :  { %61 = dma.hbm_to_vmem [thread:$0]  %s3206_s3, 512, %s56_s11, [#allocation10], %s3063_s28, %s3063_s28, %s3064_s29  }
  0x46   :  { %3054 = dma.done.wait [#allocation4], 1024  }
  0x47   :  { %3055 = vsyncadd [#allocation4], 4294966272 }
  0x48   :  { %3056 = dma.done.wait [#allocation7], 32896  }
  0x49   :  { %3057 = vsyncadd [#allocation7], 4294934400 }
  0x4a   :  { %3058 = dma.done.wait [#allocation10], 512  }
  0x4b   :  { %3059 = vsyncadd [#allocation10], 4294966784  ;;  %v2553_v0 = vld [vmem:[#allocation6 + $0x4] ss:$16 sps:$4 sm:$0xff]   ;;  %v2555_v1 = vld [vmem:[#allocation6 + $0xc] ss:$16 sps:$4 sm:$0xff]  }
  0x4c   :  { %1703 = vmatprep.subr.bf16.mxu0 %v2553_v0  ;;  %v2557_v2 = vld [vmem:[#allocation6] ss:$16 sps:$4 sm:$0xff]   ;;  %v2558_v3 = vld [vmem:[#allocation6 + $0x8] ss:$16 sps:$4 sm:$0xff]   ;;  %1875 = vmatprep.subr.bf16.mxu1 %v2555_v1  ;;  %v2559_v4 = vld [vmem:[#allocation6 + $0x24] ss:$16 sps:$4 sm:$0xff]  }
  0x4d   :  { %1704 = vmatpush1.bf16.msra.mxu0 %v2557_v2  ;;  %1876 = vmatpush1.bf16.msra.mxu1 %v2558_v3  ;;  %v2561_v5 = vld [vmem:[#allocation6 + $0x2c] ss:$16 sps:$4 sm:$0xff]   ;;  %v2563_v6 = vld [vmem:[#allocation6 + $0x20] ss:$16 sps:$4 sm:$0xff]   ;;  %v2564_v7 = vld [vmem:[#allocation6 + $0x28] ss:$16 sps:$4 sm:$0xff]  }
  0x4e   :  { %1705 = vmatprep.subr.bf16.mxu0 %v2559_v4  ;;  %1877 = vmatprep.subr.bf16.mxu1 %v2561_v5  ;;  %v2565_v8 = vld [vmem:[#allocation6 + $0x44] ss:$16 sps:$4 sm:$0xff]   ;;  %v2567_v9 = vld [vmem:[#allocation6 + $0x4c] ss:$16 sps:$4 sm:$0xff]   ;;  %v2569_v10 = vld [vmem:[#allocation6 + $0x40] ss:$16 sps:$4 sm:$0xff]  }
  0x4f   :  { %v2570_v11 = vld [vmem:[#allocation6 + $0x48] ss:$16 sps:$4 sm:$0xff]   ;;  %v2571_v12 = vld [vmem:[#allocation6 + $0x64] ss:$16 sps:$4 sm:$0xff]   ;;  %v2573_v13 = vld [vmem:[#allocation6 + $0x6c] ss:$16 sps:$4 sm:$0xff]  }
  0x50   :  { %v2575_v14 = vld [vmem:[#allocation6 + $0x60] ss:$16 sps:$4 sm:$0xff]   ;;  %v2576_v15 = vld [vmem:[#allocation6 + $0x68] ss:$16 sps:$4 sm:$0xff]   ;;  %v2577_v16 = vld [vmem:[#allocation6 + $0x84] ss:$16 sps:$4 sm:$0xff]  }
  0x51   :  { %1706 = vmatpush1.bf16.msra.mxu0 %v2563_v6  ;;  %1878 = vmatpush1.bf16.msra.mxu1 %v2564_v7  ;;  %v2579_v17 = vld [vmem:[#allocation6 + $0x8c] ss:$16 sps:$4 sm:$0xff]   ;;  %v2581_v18 = vld [vmem:[#allocation6 + $0x80] ss:$16 sps:$4 sm:$0xff]   ;;  %v2582_v19 = vld [vmem:[#allocation6 + $0x88] ss:$16 sps:$4 sm:$0xff]  }
  0x52   :  { %1707 = vmatprep.subr.bf16.mxu0 %v2565_v8  ;;  %1879 = vmatprep.subr.bf16.mxu1 %v2567_v9  ;;  %v2583_v20 = vld [vmem:[#allocation6 + $0xa4] ss:$16 sps:$4 sm:$0xff]   ;;  %v2585_v21 = vld [vmem:[#allocation6 + $0xac] ss:$16 sps:$4 sm:$0xff]   ;;  %v2587_v22 = vld [vmem:[#allocation6 + $0xa0] ss:$16 sps:$4 sm:$0xff]  }
  0x53   :  { %v2588_v23 = vld [vmem:[#allocation6 + $0xa8] ss:$16 sps:$4 sm:$0xff]   ;;  %v2589_v24 = vld [vmem:[#allocation6 + $0xc4] ss:$16 sps:$4 sm:$0xff]   ;;  %v2591_v25 = vld [vmem:[#allocation6 + $0xcc] ss:$16 sps:$4 sm:$0xff]  }
  0x54   :  { %v2593_v26 = vld [vmem:[#allocation6 + $0xc0] ss:$16 sps:$4 sm:$0xff]   ;;  %v2594_v27 = vld [vmem:[#allocation6 + $0xc8] ss:$16 sps:$4 sm:$0xff]   ;;  %v2595_v28 = vld [vmem:[#allocation6 + $0xe4] ss:$16 sps:$4 sm:$0xff]  }
  0x55   :  { %1708 = vmatpush1.bf16.msra.mxu0 %v2569_v10  ;;  %1880 = vmatpush1.bf16.msra.mxu1 %v2570_v11  ;;  %v2597_v29 = vld [vmem:[#allocation6 + $0xec] ss:$16 sps:$4 sm:$0xff]   ;;  %v2599_v30 = vld [vmem:[#allocation6 + $0xe0] ss:$16 sps:$4 sm:$0xff]   ;;  %v2600_v31 = vld [vmem:[#allocation6 + $0xe8] ss:$16 sps:$4 sm:$0xff]  }
  0x56   :  { %1709 = vmatprep.subr.bf16.mxu0 %v2571_v12  ;;  %1881 = vmatprep.subr.bf16.mxu1 %v2573_v13  ;;  %v2601_v32 = vld [vmem:[#allocation6 + $0x104] ss:$16 sps:$4 sm:$0xff]   ;;  %v2603_v33 = vld [vmem:[#allocation6 + $0x10c] ss:$16 sps:$4 sm:$0xff]   ;;  %v2605_v34 = vld [vmem:[#allocation6 + $0x100] ss:$16 sps:$4 sm:$0xff]  }
  0x57   :  { %v2606_v35 = vld [vmem:[#allocation6 + $0x108] ss:$16 sps:$4 sm:$0xff]   ;;  %v2607_v36 = vld [vmem:[#allocation6 + $0x124] ss:$16 sps:$4 sm:$0xff]   ;;  %v2609_v37 = vld [vmem:[#allocation6 + $0x12c] ss:$16 sps:$4 sm:$0xff]  }
  0x58   :  { %v2611_v38 = vld [vmem:[#allocation6 + $0x120] ss:$16 sps:$4 sm:$0xff]   ;;  %v2612_v39 = vld [vmem:[#allocation6 + $0x128] ss:$16 sps:$4 sm:$0xff]   ;;  %v2613_v40 = vld [vmem:[#allocation6 + $0x144] ss:$16 sps:$4 sm:$0xff]  }
  0x59   :  { %1710 = vmatpush1.bf16.msra.mxu0 %v2575_v14  ;;  %1882 = vmatpush1.bf16.msra.mxu1 %v2576_v15  ;;  %v2615_v41 = vld [vmem:[#allocation6 + $0x14c] ss:$16 sps:$4 sm:$0xff]   ;;  %v2617_v42 = vld [vmem:[#allocation6 + $0x140] ss:$16 sps:$4 sm:$0xff]   ;;  %v2618_v43 = vld [vmem:[#allocation6 + $0x148] ss:$16 sps:$4 sm:$0xff]  }
  0x5a   :  { %1711 = vmatprep.subr.bf16.mxu0 %v2577_v16  ;;  %1883 = vmatprep.subr.bf16.mxu1 %v2579_v17  ;;  %v2619_v44 = vld [vmem:[#allocation6 + $0x164] ss:$16 sps:$4 sm:$0xff]   ;;  %v2621_v45 = vld [vmem:[#allocation6 + $0x16c] ss:$16 sps:$4 sm:$0xff]   ;;  %v2623_v48 = vld [vmem:[#allocation6 + $0x160] ss:$16 sps:$4 sm:$0xff]  }
  0x5b   :  { %v119_v46 = vld [vmem:[#allocation3] sm:$0xff]  ;;  %v2624_v49 = vld [vmem:[#allocation6 + $0x168] ss:$16 sps:$4 sm:$0xff]   ;;  %v2627_v52 = vld [vmem:[#allocation6 + $0x18c] ss:$16 sps:$4 sm:$0xff]   ;;  %vm2105_vm0 = vcmask 130048  }
  0x5c   :  { %v123_v47 = vld [vmem:[#allocation3 + $0x20] sm:$0xff]  ;;  %v2630_v54 = vld [vmem:[#allocation6 + $0x188] ss:$16 sps:$4 sm:$0xff]   ;;  %v2633_v56 = vld [vmem:[#allocation6 + $0x1ac] ss:$16 sps:$4 sm:$0xff]   ;;  %s3073_s29 = smov [#allocation11]  }
  0x5d   :  { %1712 = vmatpush1.bf16.msra.mxu0 %v2581_v18  ;;  %1884 = vmatpush1.bf16.msra.mxu1 %v2582_v19  ;;  %v2231_v50 = vcombine.high %v119_v46, %v123_v47  ;;  %v2625_v51 = vld [vmem:[#allocation6 + $0x184] ss:$16 sps:$4 sm:$0xff]   ;;  %v2629_v53 = vld [vmem:[#allocation6 + $0x180] ss:$16 sps:$4 sm:$0xff]   ;;  %v2636_v58 = vld [vmem:[#allocation6 + $0x1a8] ss:$16 sps:$4 sm:$0xff]   ;;  %v2230_v5 = vcombine.low %v119_v46, %v123_v47 }
  0x5e   :  { %1713 = vmatprep.subr.bf16.mxu0 %v2583_v20  ;;  %1885 = vmatprep.subr.bf16.mxu1 %v2585_v21  ;;  %v2631_v55 = vld [vmem:[#allocation6 + $0x1a4] ss:$16 sps:$4 sm:$0xff]   ;;  %v2635_v57 = vld [vmem:[#allocation6 + $0x1a0] ss:$16 sps:$4 sm:$0xff]   ;;  %v2639_v60 = vld [vmem:[#allocation6 + $0x1cc] ss:$16 sps:$4 sm:$0xff]  }
  0x5f   :  { %1735 = vmatprep.mubr.bf16.mxu0 %v2231_v50  ;;  %1907 = vmatprep.mubr.bf16.mxu1 %v2231_v50  ;;  %v2637_v59 = vld [vmem:[#allocation6 + $0x1c4] ss:$16 sps:$4 sm:$0xff]   ;;  %v2641_v61 = vld [vmem:[#allocation6 + $0x1c0] ss:$16 sps:$4 sm:$0xff]   ;;  %v2642_v62 = vld [vmem:[#allocation6 + $0x1c8] ss:$16 sps:$4 sm:$0xff]  }
  0x60   :  { %v2643_v63 = vld [vmem:[#allocation6 + $0x1e4] ss:$16 sps:$4 sm:$0xff]   ;;  %v2645_v0 = vld [vmem:[#allocation6 + $0x1ec] ss:$16 sps:$4 sm:$0xff]   ;;  %v2647_v1 = vld [vmem:[#allocation6 + $0x1e0] ss:$16 sps:$4 sm:$0xff]  }
  0x61   :  { %1714 = vmatpush1.bf16.msra.mxu0 %v2587_v22  ;;  %1886 = vmatpush1.bf16.msra.mxu1 %v2588_v23  ;;  %v2648_v2 = vld [vmem:[#allocation6 + $0x1e8] ss:$16 sps:$4 sm:$0xff]   ;;  %v2651_v3 = vld [vmem:[#allocation6 + $0x204] ss:$16 sps:$4 sm:$0xff]   ;;  %v2654_v4 = vld [vmem:[#allocation6 + $0x20c] ss:$16 sps:$4 sm:$0xff]  }
  0x62   :  { %1715 = vmatprep.subr.bf16.mxu0 %v2589_v24  ;;  %1887 = vmatprep.subr.bf16.mxu1 %v2591_v25  ;;  %v2649_v6 = vld [vmem:[#allocation6 + $0x200] ss:$16 sps:$4 sm:$0xff]   ;;  %v2652_v7 = vld [vmem:[#allocation6 + $0x208] ss:$16 sps:$4 sm:$0xff]   ;;  %v2657_v8 = vld [vmem:[#allocation6 + $0x224] ss:$16 sps:$4 sm:$0xff]  }
  0x63   :  { %v2660_v9 = vld [vmem:[#allocation6 + $0x22c] ss:$16 sps:$4 sm:$0xff]   ;;  %v2655_v10 = vld [vmem:[#allocation6 + $0x220] ss:$16 sps:$4 sm:$0xff]   ;;  %v2658_v11 = vld [vmem:[#allocation6 + $0x228] ss:$16 sps:$4 sm:$0xff]  }
  0x64   :  { %v2663_v12 = vld [vmem:[#allocation6 + $0x244] ss:$16 sps:$4 sm:$0xff]   ;;  %v2666_v13 = vld [vmem:[#allocation6 + $0x24c] ss:$16 sps:$4 sm:$0xff]   ;;  %v2661_v14 = vld [vmem:[#allocation6 + $0x240] ss:$16 sps:$4 sm:$0xff]  }
  0x65   :  { %1716 = vmatpush1.bf16.msra.mxu0 %v2593_v26  ;;  %1888 = vmatpush1.bf16.msra.mxu1 %v2594_v27  ;;  %v2664_v15 = vld [vmem:[#allocation6 + $0x248] ss:$16 sps:$4 sm:$0xff]   ;;  %v2669_v16 = vld [vmem:[#allocation6 + $0x264] ss:$16 sps:$4 sm:$0xff]   ;;  %v2672_v17 = vld [vmem:[#allocation6 + $0x26c] ss:$16 sps:$4 sm:$0xff]  }
  0x66   :  { %1717 = vmatprep.subr.bf16.mxu0 %v2595_v28  ;;  %1889 = vmatprep.subr.bf16.mxu1 %v2597_v29  ;;  %v2667_v18 = vld [vmem:[#allocation6 + $0x260] ss:$16 sps:$4 sm:$0xff]   ;;  %v2670_v19 = vld [vmem:[#allocation6 + $0x268] ss:$16 sps:$4 sm:$0xff]   ;;  %v2675_v20 = vld [vmem:[#allocation6 + $0x284] ss:$16 sps:$4 sm:$0xff]  }
  0x67   :  { %v2678_v21 = vld [vmem:[#allocation6 + $0x28c] ss:$16 sps:$4 sm:$0xff]   ;;  %v2673_v22 = vld [vmem:[#allocation6 + $0x280] ss:$16 sps:$4 sm:$0xff]   ;;  %v2676_v23 = vld [vmem:[#allocation6 + $0x288] ss:$16 sps:$4 sm:$0xff]  }
  0x68   :  { %v2681_v24 = vld [vmem:[#allocation6 + $0x2a4] ss:$16 sps:$4 sm:$0xff]   ;;  %v2684_v25 = vld [vmem:[#allocation6 + $0x2ac] ss:$16 sps:$4 sm:$0xff]   ;;  %v2679_v26 = vld [vmem:[#allocation6 + $0x2a0] ss:$16 sps:$4 sm:$0xff]  }
  0x69   :  { %1718 = vmatpush1.bf16.msra.mxu0 %v2599_v30  ;;  %1890 = vmatpush1.bf16.msra.mxu1 %v2600_v31  ;;  %v2682_v27 = vld [vmem:[#allocation6 + $0x2a8] ss:$16 sps:$4 sm:$0xff]   ;;  %v2687_v28 = vld [vmem:[#allocation6 + $0x2c4] ss:$16 sps:$4 sm:$0xff]   ;;  %v2690_v29 = vld [vmem:[#allocation6 + $0x2cc] ss:$16 sps:$4 sm:$0xff]  }
  0x6a   :  { %1719 = vmatprep.subr.bf16.mxu0 %v2601_v32  ;;  %1891 = vmatprep.subr.bf16.mxu1 %v2603_v33  ;;  %v3161_v30 = vld [vmem:[#allocation3 + $0x8] sm:$0xff]  ;;  %v2685_v32 = vld [vmem:[#allocation6 + $0x2c0] ss:$16 sps:$4 sm:$0xff]   ;;  %v2711_v47 = vld [vmem:[#allocation6 + $0x344] ss:$16 sps:$4 sm:$0xff]   ;;  %s2216_s22 = sshll.u32 %s3073_s29, 4  ;;  %s2217_s22 = int_to_ptr.vmem [resolvable:$true] %s2216_s22 }
  0x6b   :  { %v3163_v31 = vld [vmem:[#allocation3 + $0x28] sm:$0xff]  ;;  %p3037_p5 = scmp.lt.s32.totalorder %s2217_s22, %s2217_s22 }
  0x6c   :  { %v2688_v33 = vld [vmem:[#allocation6 + $0x2c8] ss:$16 sps:$4 sm:$0xff]  }
  0x6d   :  { %1720 = vmatpush1.bf16.msra.mxu0 %v2605_v34  ;;  %1892 = vmatpush1.bf16.msra.mxu1 %v2606_v35  ;;  %v2233_v34 = vcombine.high %v3161_v30, %v3163_v31  ;;  %v2693_v35 = vld [vmem:[#allocation6 + $0x2e4] ss:$16 sps:$4 sm:$0xff]   ;;  %v2706_v46 = vld [vmem:[#allocation6 + $0x328] ss:$16 sps:$4 sm:$0xff]  }
  0x6e   :  { %1721 = vmatprep.subr.bf16.mxu0 %v2607_v36  ;;  %1893 = vmatprep.subr.bf16.mxu1 %v2609_v37  ;;  %v2696_v36 = vld [vmem:[#allocation6 + $0x2ec] ss:$16 sps:$4 sm:$0xff]   ;;  %v2691_v37 = vld [vmem:[#allocation6 + $0x2e0] ss:$16 sps:$4 sm:$0xff]   ;;  %v2712_v50 = vld [vmem:[#allocation6 + $0x348] ss:$16 sps:$4 sm:$0xff]  }
  0x71   :  { %1722 = vmatpush1.bf16.msra.mxu0 %v2611_v38  ;;  %1894 = vmatpush1.bf16.msra.mxu1 %v2612_v39  ;;  %v2694_v38 = vld [vmem:[#allocation6 + $0x2e8] ss:$16 sps:$4 sm:$0xff]   ;;  %v2699_v39 = vld [vmem:[#allocation6 + $0x304] ss:$16 sps:$4 sm:$0xff]  }
  0x72   :  { %1723 = vmatprep.subr.bf16.mxu0 %v2613_v40  ;;  %1895 = vmatprep.subr.bf16.mxu1 %v2615_v41  ;;  %v2702_v40 = vld [vmem:[#allocation6 + $0x30c] ss:$16 sps:$4 sm:$0xff]   ;;  %v2697_v41 = vld [vmem:[#allocation6 + $0x300] ss:$16 sps:$4 sm:$0xff]  }
  0x75   :  { %1724 = vmatpush1.bf16.msra.mxu0 %v2617_v42  ;;  %1896 = vmatpush1.bf16.msra.mxu1 %v2618_v43  ;;  %v2700_v42 = vld [vmem:[#allocation6 + $0x308] ss:$16 sps:$4 sm:$0xff]   ;;  %v2705_v43 = vld [vmem:[#allocation6 + $0x324] ss:$16 sps:$4 sm:$0xff]  }
  0x76   :  { %1725 = vmatprep.subr.bf16.mxu0 %v2619_v44  ;;  %1897 = vmatprep.subr.bf16.mxu1 %v2621_v45  ;;  %v2708_v44 = vld [vmem:[#allocation6 + $0x32c] ss:$16 sps:$4 sm:$0xff]   ;;  %v2703_v45 = vld [vmem:[#allocation6 + $0x320] ss:$16 sps:$4 sm:$0xff]  }
  0x79   :  { %1726 = vmatpush1.bf16.msra.mxu0 %v2623_v48  ;;  %1898 = vmatpush1.bf16.msra.mxu1 %v2624_v49  ;;  %v2714_v48 = vld [vmem:[#allocation6 + $0x34c] ss:$16 sps:$4 sm:$0xff]   ;;  %v2709_v49 = vld [vmem:[#allocation6 + $0x340] ss:$16 sps:$4 sm:$0xff]  }
  0x7a   :  { %1727 = vmatprep.subr.bf16.mxu0 %v2625_v51  ;;  %1899 = vmatprep.subr.bf16.mxu1 %v2627_v52  ;;  %v2717_v51 = vld [vmem:[#allocation6 + $0x364] ss:$16 sps:$4 sm:$0xff]   ;;  %v2720_v52 = vld [vmem:[#allocation6 + $0x36c] ss:$16 sps:$4 sm:$0xff]  }
  0x7d   :  { %1728 = vmatpush1.bf16.msra.mxu0 %v2629_v53  ;;  %1900 = vmatpush1.bf16.msra.mxu1 %v2630_v54  ;;  %v2715_v53 = vld [vmem:[#allocation6 + $0x360] ss:$16 sps:$4 sm:$0xff]   ;;  %v2718_v54 = vld [vmem:[#allocation6 + $0x368] ss:$16 sps:$4 sm:$0xff]  }
  0x7e   :  { %1729 = vmatprep.subr.bf16.mxu0 %v2631_v55  ;;  %1901 = vmatprep.subr.bf16.mxu1 %v2633_v56  ;;  %v2723_v55 = vld [vmem:[#allocation6 + $0x384] ss:$16 sps:$4 sm:$0xff]   ;;  %v2726_v56 = vld [vmem:[#allocation6 + $0x38c] ss:$16 sps:$4 sm:$0xff]  }
  0x81   :  { %1730 = vmatpush1.bf16.msra.mxu0 %v2635_v57  ;;  %1902 = vmatpush1.bf16.msra.mxu1 %v2636_v58  ;;  %v2721_v57 = vld [vmem:[#allocation6 + $0x380] ss:$16 sps:$4 sm:$0xff]   ;;  %v2724_v58 = vld [vmem:[#allocation6 + $0x388] ss:$16 sps:$4 sm:$0xff]  }
  0x82   :  { %1731 = vmatprep.subr.bf16.mxu0 %v2637_v59  ;;  %1903 = vmatprep.subr.bf16.mxu1 %v2639_v60  ;;  %v2729_v59 = vld [vmem:[#allocation6 + $0x3a4] ss:$16 sps:$4 sm:$0xff]   ;;  %v2732_v60 = vld [vmem:[#allocation6 + $0x3ac] ss:$16 sps:$4 sm:$0xff]  }
  0x85   :  { %1732 = vmatpush1.bf16.msra.mxu0 %v2641_v61  ;;  %1904 = vmatpush1.bf16.msra.mxu1 %v2642_v62  ;;  %v2727_v61 = vld [vmem:[#allocation6 + $0x3a0] ss:$16 sps:$4 sm:$0xff]   ;;  %v2730_v62 = vld [vmem:[#allocation6 + $0x3a8] ss:$16 sps:$4 sm:$0xff]  }
  0x86   :  { %1733 = vmatprep.subr.bf16.mxu0 %v2643_v63  ;;  %1905 = vmatprep.subr.bf16.mxu1 %v2645_v0  ;;  %v2735_v63 = vld [vmem:[#allocation6 + $0x3c4] ss:$16 sps:$4 sm:$0xff]   ;;  %v2738_v0 = vld [vmem:[#allocation6 + $0x3cc] ss:$16 sps:$4 sm:$0xff]  }
  0x89   :  { %1734 = vmatpush1.bf16.msra.mxu0 %v2647_v1  ;;  %1906 = vmatpush1.bf16.msra.mxu1 %v2648_v2  ;;  %v2733_v1 = vld [vmem:[#allocation6 + $0x3c0] ss:$16 sps:$4 sm:$0xff]   ;;  %v2736_v2 = vld [vmem:[#allocation6 + $0x3c8] ss:$16 sps:$4 sm:$0xff]  }
  0x8a   :  { %1746 = vmatprep.subr.bf16.mxu0 %v2651_v3  ;;  %1918 = vmatprep.subr.bf16.mxu1 %v2654_v4  ;;  %v2741_v3 = vld [vmem:[#allocation6 + $0x3e4] ss:$16 sps:$4 sm:$0xff]   ;;  %v2744_v4 = vld [vmem:[#allocation6 + $0x3ec] ss:$16 sps:$4 sm:$0xff]  }
  0x8c   :  { %1736 = vmatmul.mubr.bf16.vlgmr.msra.gmra.mrb[0].mxu0 %v2230_v5  ;;  %1908 = vmatmul.mubr.bf16.vlgmr.msra.gmra.mrb[0].mxu1 %v2230_v5  ;;  %v2739_v5 = vld [vmem:[#allocation6 + $0x3e0] ss:$16 sps:$4 sm:$0xff]  }
  0x8d   :  { %1747 = vmatpush1.bf16.msra.mxu0 %v2649_v6  ;;  %1919 = vmatpush1.bf16.msra.mxu1 %v2652_v7  ;;  %v2742_v6 = vld [vmem:[#allocation6 + $0x3e8] ss:$16 sps:$4 sm:$0xff]   ;;  %v2747_v7 = vld [vmem:[#allocation6 + $0x404] ss:$16 sps:$4 sm:$0xff]  }
  0x8e   :  { %1748 = vmatprep.subr.bf16.mxu0 %v2657_v8  ;;  %1920 = vmatprep.subr.bf16.mxu1 %v2660_v9  ;;  %v2750_v8 = vld [vmem:[#allocation6 + $0x40c] ss:$16 sps:$4 sm:$0xff]   ;;  %v2232_v9 = vcombine.low %v3161_v30, %v3163_v31  ;;  %v2772_v30 = vld [vmem:[#allocation6 + $0x488] ss:$16 sps:$4 sm:$0xff]   ;;  %v2777_v31 = vld [vmem:[#allocation6 + $0x4a4] ss:$16 sps:$4 sm:$0xff]  }
  0x8f   :  { %1778 = vmatprep.mubr.bf16.mxu0 %v2233_v34  ;;  %1950 = vmatprep.mubr.bf16.mxu1 %v2233_v34  ;;  %v2778_v34 = vld [vmem:[#allocation6 + $0x4a8] ss:$16 sps:$4 sm:$0xff]  }
  0x91   :  { %1749 = vmatpush1.bf16.msra.mxu0 %v2655_v10  ;;  %1921 = vmatpush1.bf16.msra.mxu1 %v2658_v11  ;;  %v2745_v10 = vld [vmem:[#allocation6 + $0x400] ss:$16 sps:$4 sm:$0xff]   ;;  %v2748_v11 = vld [vmem:[#allocation6 + $0x408] ss:$16 sps:$4 sm:$0xff]  }
  0x92   :  { %1750 = vmatprep.subr.bf16.mxu0 %v2663_v12  ;;  %1922 = vmatprep.subr.bf16.mxu1 %v2666_v13  ;;  %v2753_v12 = vld [vmem:[#allocation6 + $0x424] ss:$16 sps:$4 sm:$0xff]   ;;  %v2756_v13 = vld [vmem:[#allocation6 + $0x42c] ss:$16 sps:$4 sm:$0xff]  }
  0x95   :  { %1751 = vmatpush1.bf16.msra.mxu0 %v2661_v14  ;;  %1923 = vmatpush1.bf16.msra.mxu1 %v2664_v15  ;;  %v3169_v14 = vld [vmem:[#allocation3 + $0x10] sm:$0xff] }
  0x96   :  { %1752 = vmatprep.subr.bf16.mxu0 %v2669_v16  ;;  %1924 = vmatprep.subr.bf16.mxu1 %v2672_v17  ;;  %v3171_v15 = vld [vmem:[#allocation3 + $0x30] sm:$0xff] }
  0x97   :  { %v2235_v16 = vcombine.high %v3169_v14, %v3171_v15  ;;  %v2751_v17 = vld [vmem:[#allocation6 + $0x420] ss:$16 sps:$4 sm:$0xff]  }
  0x99   :  { %1753 = vmatpush1.bf16.msra.mxu0 %v2667_v18  ;;  %1925 = vmatpush1.bf16.msra.mxu1 %v2670_v19  ;;  %v2754_v18 = vld [vmem:[#allocation6 + $0x428] ss:$16 sps:$4 sm:$0xff]   ;;  %v2759_v19 = vld [vmem:[#allocation6 + $0x444] ss:$16 sps:$4 sm:$0xff]  }
  0x9a   :  { %1754 = vmatprep.subr.bf16.mxu0 %v2675_v20  ;;  %1926 = vmatprep.subr.bf16.mxu1 %v2678_v21  ;;  %v2762_v20 = vld [vmem:[#allocation6 + $0x44c] ss:$16 sps:$4 sm:$0xff]   ;;  %v2757_v21 = vld [vmem:[#allocation6 + $0x440] ss:$16 sps:$4 sm:$0xff]  }
  0x9d   :  { %1755 = vmatpush1.bf16.msra.mxu0 %v2673_v22  ;;  %1927 = vmatpush1.bf16.msra.mxu1 %v2676_v23  ;;  %v2760_v22 = vld [vmem:[#allocation6 + $0x448] ss:$16 sps:$4 sm:$0xff]   ;;  %v2765_v23 = vld [vmem:[#allocation6 + $0x464] ss:$16 sps:$4 sm:$0xff]  }
  0x9e   :  { %1756 = vmatprep.subr.bf16.mxu0 %v2681_v24  ;;  %1928 = vmatprep.subr.bf16.mxu1 %v2684_v25  ;;  %v2768_v24 = vld [vmem:[#allocation6 + $0x46c] ss:$16 sps:$4 sm:$0xff]   ;;  %v2763_v25 = vld [vmem:[#allocation6 + $0x460] ss:$16 sps:$4 sm:$0xff]  }
  0xa1   :  { %1757 = vmatpush1.bf16.msra.mxu0 %v2679_v26  ;;  %1929 = vmatpush1.bf16.msra.mxu1 %v2682_v27  ;;  %v2766_v26 = vld [vmem:[#allocation6 + $0x468] ss:$16 sps:$4 sm:$0xff]   ;;  %v2771_v27 = vld [vmem:[#allocation6 + $0x484] ss:$16 sps:$4 sm:$0xff]  }
  0xa2   :  { %1758 = vmatprep.subr.bf16.mxu0 %v2687_v28  ;;  %1930 = vmatprep.subr.bf16.mxu1 %v2690_v29  ;;  %v2774_v28 = vld [vmem:[#allocation6 + $0x48c] ss:$16 sps:$4 sm:$0xff]   ;;  %v2769_v29 = vld [vmem:[#allocation6 + $0x480] ss:$16 sps:$4 sm:$0xff]  }
  0xa5   :  { %1759 = vmatpush1.bf16.msra.mxu0 %v2685_v32  ;;  %1931 = vmatpush1.bf16.msra.mxu1 %v2688_v33  ;;  %v2780_v32 = vld [vmem:[#allocation6 + $0x4ac] ss:$16 sps:$4 sm:$0xff]   ;;  %v2775_v33 = vld [vmem:[#allocation6 + $0x4a0] ss:$16 sps:$4 sm:$0xff]  }
  0xa6   :  { %1760 = vmatprep.subr.bf16.mxu0 %v2693_v35  ;;  %1932 = vmatprep.subr.bf16.mxu1 %v2696_v36  ;;  %v2783_v35 = vld [vmem:[#allocation6 + $0x4c4] ss:$16 sps:$4 sm:$0xff]   ;;  %v2786_v36 = vld [vmem:[#allocation6 + $0x4cc] ss:$16 sps:$4 sm:$0xff]  }
  0xa9   :  { %1761 = vmatpush1.bf16.msra.mxu0 %v2691_v37  ;;  %1933 = vmatpush1.bf16.msra.mxu1 %v2694_v38  ;;  %v2781_v37 = vld [vmem:[#allocation6 + $0x4c0] ss:$16 sps:$4 sm:$0xff]   ;;  %v2784_v38 = vld [vmem:[#allocation6 + $0x4c8] ss:$16 sps:$4 sm:$0xff]  }
  0xaa   :  { %1762 = vmatprep.subr.bf16.mxu0 %v2699_v39  ;;  %1934 = vmatprep.subr.bf16.mxu1 %v2702_v40  ;;  %v2789_v39 = vld [vmem:[#allocation6 + $0x4e4] ss:$16 sps:$4 sm:$0xff]   ;;  %v2792_v40 = vld [vmem:[#allocation6 + $0x4ec] ss:$16 sps:$4 sm:$0xff]  }
  0xad   :  { %1763 = vmatpush1.bf16.msra.mxu0 %v2697_v41  ;;  %1935 = vmatpush1.bf16.msra.mxu1 %v2700_v42  ;;  %v2787_v41 = vld [vmem:[#allocation6 + $0x4e0] ss:$16 sps:$4 sm:$0xff]   ;;  %v2790_v42 = vld [vmem:[#allocation6 + $0x4e8] ss:$16 sps:$4 sm:$0xff]  }
  0xae   :  { %1764 = vmatprep.subr.bf16.mxu0 %v2705_v43  ;;  %1936 = vmatprep.subr.bf16.mxu1 %v2708_v44  ;;  %v2795_v43 = vld [vmem:[#allocation6 + $0x504] ss:$16 sps:$4 sm:$0xff]   ;;  %v2798_v44 = vld [vmem:[#allocation6 + $0x50c] ss:$16 sps:$4 sm:$0xff]  }
  0xb1   :  { %1765 = vmatpush1.bf16.msra.mxu0 %v2703_v45  ;;  %1937 = vmatpush1.bf16.msra.mxu1 %v2706_v46  ;;  %v2793_v45 = vld [vmem:[#allocation6 + $0x500] ss:$16 sps:$4 sm:$0xff]   ;;  %v2796_v46 = vld [vmem:[#allocation6 + $0x508] ss:$16 sps:$4 sm:$0xff]  }
  0xb2   :  { %1766 = vmatprep.subr.bf16.mxu0 %v2711_v47  ;;  %1938 = vmatprep.subr.bf16.mxu1 %v2714_v48  ;;  %v2801_v47 = vld [vmem:[#allocation6 + $0x524] ss:$16 sps:$4 sm:$0xff]   ;;  %v2804_v48 = vld [vmem:[#allocation6 + $0x52c] ss:$16 sps:$4 sm:$0xff]  }
  0xb5   :  { %1767 = vmatpush1.bf16.msra.mxu0 %v2709_v49  ;;  %1939 = vmatpush1.bf16.msra.mxu1 %v2712_v50  ;;  %v2799_v49 = vld [vmem:[#allocation6 + $0x520] ss:$16 sps:$4 sm:$0xff]   ;;  %v2802_v50 = vld [vmem:[#allocation6 + $0x528] ss:$16 sps:$4 sm:$0xff]  }
  0xb6   :  { %1768 = vmatprep.subr.bf16.mxu0 %v2717_v51  ;;  %1940 = vmatprep.subr.bf16.mxu1 %v2720_v52  ;;  %v2807_v51 = vld [vmem:[#allocation6 + $0x544] ss:$16 sps:$4 sm:$0xff]   ;;  %v2810_v52 = vld [vmem:[#allocation6 + $0x54c] ss:$16 sps:$4 sm:$0xff]  }
  0xb9   :  { %1769 = vmatpush1.bf16.msra.mxu0 %v2715_v53  ;;  %1941 = vmatpush1.bf16.msra.mxu1 %v2718_v54  ;;  %v2805_v53 = vld [vmem:[#allocation6 + $0x540] ss:$16 sps:$4 sm:$0xff]   ;;  %v2808_v54 = vld [vmem:[#allocation6 + $0x548] ss:$16 sps:$4 sm:$0xff]  }
  0xba   :  { %1770 = vmatprep.subr.bf16.mxu0 %v2723_v55  ;;  %1942 = vmatprep.subr.bf16.mxu1 %v2726_v56  ;;  %v2813_v55 = vld [vmem:[#allocation6 + $0x564] ss:$16 sps:$4 sm:$0xff]   ;;  %v2816_v56 = vld [vmem:[#allocation6 + $0x56c] ss:$16 sps:$4 sm:$0xff]  }
  0xbd   :  { %1771 = vmatpush1.bf16.msra.mxu0 %v2721_v57  ;;  %1943 = vmatpush1.bf16.msra.mxu1 %v2724_v58  ;;  %v2811_v57 = vld [vmem:[#allocation6 + $0x560] ss:$16 sps:$4 sm:$0xff]   ;;  %v2814_v58 = vld [vmem:[#allocation6 + $0x568] ss:$16 sps:$4 sm:$0xff]  }
  0xbe   :  { %1772 = vmatprep.subr.bf16.mxu0 %v2729_v59  ;;  %1944 = vmatprep.subr.bf16.mxu1 %v2732_v60  ;;  %v2819_v59 = vld [vmem:[#allocation6 + $0x584] ss:$16 sps:$4 sm:$0xff]   ;;  %v2822_v60 = vld [vmem:[#allocation6 + $0x58c] ss:$16 sps:$4 sm:$0xff]  }
  0xc1   :  { %1773 = vmatpush1.bf16.msra.mxu0 %v2727_v61  ;;  %1945 = vmatpush1.bf16.msra.mxu1 %v2730_v62  ;;  %v2817_v61 = vld [vmem:[#allocation6 + $0x580] ss:$16 sps:$4 sm:$0xff]   ;;  %v2820_v62 = vld [vmem:[#allocation6 + $0x588] ss:$16 sps:$4 sm:$0xff]  }
  0xc2   :  { %1774 = vmatprep.subr.bf16.mxu0 %v2735_v63  ;;  %1946 = vmatprep.subr.bf16.mxu1 %v2738_v0  ;;  %v2825_v63 = vld [vmem:[#allocation6 + $0x5a4] ss:$16 sps:$4 sm:$0xff]   ;;  %v2828_v0 = vld [vmem:[#allocation6 + $0x5ac] ss:$16 sps:$4 sm:$0xff]  }
  0xc5   :  { %1775 = vmatpush1.bf16.msra.mxu0 %v2733_v1  ;;  %1947 = vmatpush1.bf16.msra.mxu1 %v2736_v2  ;;  %v2823_v1 = vld [vmem:[#allocation6 + $0x5a0] ss:$16 sps:$4 sm:$0xff]   ;;  %v2826_v2 = vld [vmem:[#allocation6 + $0x5a8] ss:$16 sps:$4 sm:$0xff]  }
  0xc6   :  { %1776 = vmatprep.subr.bf16.mxu0 %v2741_v3  ;;  %1948 = vmatprep.subr.bf16.mxu1 %v2744_v4  ;;  %v2831_v3 = vld [vmem:[#allocation6 + $0x5c4] ss:$16 sps:$4 sm:$0xff]   ;;  %v2834_v4 = vld [vmem:[#allocation6 + $0x5cc] ss:$16 sps:$4 sm:$0xff]  }
  0xc9   :  { %1777 = vmatpush1.bf16.msra.mxu0 %v2739_v5  ;;  %1949 = vmatpush1.bf16.msra.mxu1 %v2742_v6  ;;  %v2829_v5 = vld [vmem:[#allocation6 + $0x5c0] ss:$16 sps:$4 sm:$0xff]   ;;  %v2832_v6 = vld [vmem:[#allocation6 + $0x5c8] ss:$16 sps:$4 sm:$0xff]  }
  0xca   :  { %1789 = vmatprep.subr.bf16.mxu0 %v2747_v7  ;;  %1961 = vmatprep.subr.bf16.mxu1 %v2750_v8  ;;  %v2837_v7 = vld [vmem:[#allocation6 + $0x5e4] ss:$16 sps:$4 sm:$0xff]   ;;  %v2840_v8 = vld [vmem:[#allocation6 + $0x5ec] ss:$16 sps:$4 sm:$0xff]  }
  0xcc   :  { %1779 = vmatmul.mubr.bf16.vlgmr.msra.gmra.mrb[0].mxu0 %v2232_v9  ;;  %1951 = vmatmul.mubr.bf16.vlgmr.msra.gmra.mrb[0].mxu1 %v2232_v9  ;;  %v2835_v9 = vld [vmem:[#allocation6 + $0x5e0] ss:$16 sps:$4 sm:$0xff]  }
  0xcd   :  { %1790 = vmatpush1.bf16.msra.mxu0 %v2745_v10  ;;  %1962 = vmatpush1.bf16.msra.mxu1 %v2748_v11  ;;  %v2838_v10 = vld [vmem:[#allocation6 + $0x5e8] ss:$16 sps:$4 sm:$0xff]   ;;  %v2843_v11 = vld [vmem:[#allocation6 + $0x604] ss:$16 sps:$4 sm:$0xff]  }
  0xce   :  { %1791 = vmatprep.subr.bf16.mxu0 %v2753_v12  ;;  %1963 = vmatprep.subr.bf16.mxu1 %v2756_v13  ;;  %v2846_v12 = vld [vmem:[#allocation6 + $0x60c] ss:$16 sps:$4 sm:$0xff]   ;;  %v2234_v13 = vcombine.low %v3169_v14, %v3171_v15  ;;  %v2847_v14 = vld [vmem:[#allocation6 + $0x620] ss:$16 sps:$4 sm:$0xff]   ;;  %v2850_v15 = vld [vmem:[#allocation6 + $0x628] ss:$16 sps:$4 sm:$0xff]  }
  0xcf   :  { %1821 = vmatprep.mubr.bf16.mxu0 %v2235_v16  ;;  %1993 = vmatprep.mubr.bf16.mxu1 %v2235_v16  ;;  %v3177_v16 = vld [vmem:[#allocation3 + $0x18] sm:$0xff] }
  0xd1   :  { %1792 = vmatpush1.bf16.msra.mxu0 %v2751_v17  ;;  %1964 = vmatpush1.bf16.msra.mxu1 %v2754_v18  ;;  %v3179_v17 = vld [vmem:[#allocation3 + $0x38] sm:$0xff]  ;;  %v2841_v18 = vld [vmem:[#allocation6 + $0x600] ss:$16 sps:$4 sm:$0xff]  }
  0xd2   :  { %1793 = vmatprep.subr.bf16.mxu0 %v2759_v19  ;;  %1965 = vmatprep.subr.bf16.mxu1 %v2762_v20  ;;  %v2844_v19 = vld [vmem:[#allocation6 + $0x608] ss:$16 sps:$4 sm:$0xff]   ;;  %v2849_v20 = vld [vmem:[#allocation6 + $0x624] ss:$16 sps:$4 sm:$0xff]  }
  0xd5   :  { %1794 = vmatpush1.bf16.msra.mxu0 %v2757_v21  ;;  %1966 = vmatpush1.bf16.msra.mxu1 %v2760_v22  ;;  %v2852_v21 = vld [vmem:[#allocation6 + $0x62c] ss:$16 sps:$4 sm:$0xff]   ;;  %v2237_v22 = vcombine.high %v3177_v16, %v3179_v17 }
  0xd6   :  { %1795 = vmatprep.subr.bf16.mxu0 %v2765_v23  ;;  %1967 = vmatprep.subr.bf16.mxu1 %v2768_v24  ;;  %v2855_v23 = vld [vmem:[#allocation6 + $0x644] ss:$16 sps:$4 sm:$0xff]   ;;  %v2858_v24 = vld [vmem:[#allocation6 + $0x64c] ss:$16 sps:$4 sm:$0xff]  }
  0xd9   :  { %1796 = vmatpush1.bf16.msra.mxu0 %v2763_v25  ;;  %1968 = vmatpush1.bf16.msra.mxu1 %v2766_v26  ;;  %v2853_v25 = vld [vmem:[#allocation6 + $0x640] ss:$16 sps:$4 sm:$0xff]   ;;  %v2856_v26 = vld [vmem:[#allocation6 + $0x648] ss:$16 sps:$4 sm:$0xff]  }
  0xda   :  { %1797 = vmatprep.subr.bf16.mxu0 %v2771_v27  ;;  %1969 = vmatprep.subr.bf16.mxu1 %v2774_v28  ;;  %v2861_v27 = vld [vmem:[#allocation6 + $0x664] ss:$16 sps:$4 sm:$0xff]   ;;  %v2864_v28 = vld [vmem:[#allocation6 + $0x66c] ss:$16 sps:$4 sm:$0xff]  }
  0xdd   :  { %1798 = vmatpush1.bf16.msra.mxu0 %v2769_v29  ;;  %1970 = vmatpush1.bf16.msra.mxu1 %v2772_v30  ;;  %v2859_v29 = vld [vmem:[#allocation6 + $0x660] ss:$16 sps:$4 sm:$0xff]   ;;  %v2862_v30 = vld [vmem:[#allocation6 + $0x668] ss:$16 sps:$4 sm:$0xff]  }
  0xde   :  { %1799 = vmatprep.subr.bf16.mxu0 %v2777_v31  ;;  %1971 = vmatprep.subr.bf16.mxu1 %v2780_v32  ;;  %v2867_v31 = vld [vmem:[#allocation6 + $0x684] ss:$16 sps:$4 sm:$0xff]   ;;  %v2870_v32 = vld [vmem:[#allocation6 + $0x68c] ss:$16 sps:$4 sm:$0xff]  }
  0xe1   :  { %1800 = vmatpush1.bf16.msra.mxu0 %v2775_v33  ;;  %1972 = vmatpush1.bf16.msra.mxu1 %v2778_v34  ;;  %v2865_v33 = vld [vmem:[#allocation6 + $0x680] ss:$16 sps:$4 sm:$0xff]   ;;  %v2868_v34 = vld [vmem:[#allocation6 + $0x688] ss:$16 sps:$4 sm:$0xff]  }
  0xe2   :  { %1801 = vmatprep.subr.bf16.mxu0 %v2783_v35  ;;  %1973 = vmatprep.subr.bf16.mxu1 %v2786_v36  ;;  %v2873_v35 = vld [vmem:[#allocation6 + $0x6a4] ss:$16 sps:$4 sm:$0xff]   ;;  %v2876_v36 = vld [vmem:[#allocation6 + $0x6ac] ss:$16 sps:$4 sm:$0xff]  }
  0xe5   :  { %1802 = vmatpush1.bf16.msra.mxu0 %v2781_v37  ;;  %1974 = vmatpush1.bf16.msra.mxu1 %v2784_v38  ;;  %v2871_v37 = vld [vmem:[#allocation6 + $0x6a0] ss:$16 sps:$4 sm:$0xff]   ;;  %v2874_v38 = vld [vmem:[#allocation6 + $0x6a8] ss:$16 sps:$4 sm:$0xff]  }
  0xe6   :  { %1803 = vmatprep.subr.bf16.mxu0 %v2789_v39  ;;  %1975 = vmatprep.subr.bf16.mxu1 %v2792_v40  ;;  %v2879_v39 = vld [vmem:[#allocation6 + $0x6c4] ss:$16 sps:$4 sm:$0xff]   ;;  %v2882_v40 = vld [vmem:[#allocation6 + $0x6cc] ss:$16 sps:$4 sm:$0xff]  }
  0xe9   :  { %1804 = vmatpush1.bf16.msra.mxu0 %v2787_v41  ;;  %1976 = vmatpush1.bf16.msra.mxu1 %v2790_v42  ;;  %v2877_v41 = vld [vmem:[#allocation6 + $0x6c0] ss:$16 sps:$4 sm:$0xff]   ;;  %v2880_v42 = vld [vmem:[#allocation6 + $0x6c8] ss:$16 sps:$4 sm:$0xff]  }
  0xea   :  { %1805 = vmatprep.subr.bf16.mxu0 %v2795_v43  ;;  %1977 = vmatprep.subr.bf16.mxu1 %v2798_v44  ;;  %v2885_v43 = vld [vmem:[#allocation6 + $0x6e4] ss:$16 sps:$4 sm:$0xff]   ;;  %v2888_v44 = vld [vmem:[#allocation6 + $0x6ec] ss:$16 sps:$4 sm:$0xff]  }
  0xed   :  { %1806 = vmatpush1.bf16.msra.mxu0 %v2793_v45  ;;  %1978 = vmatpush1.bf16.msra.mxu1 %v2796_v46  ;;  %v2883_v45 = vld [vmem:[#allocation6 + $0x6e0] ss:$16 sps:$4 sm:$0xff]   ;;  %v2886_v46 = vld [vmem:[#allocation6 + $0x6e8] ss:$16 sps:$4 sm:$0xff]  }
  0xee   :  { %1807 = vmatprep.subr.bf16.mxu0 %v2801_v47  ;;  %1979 = vmatprep.subr.bf16.mxu1 %v2804_v48  ;;  %v2891_v47 = vld [vmem:[#allocation6 + $0x704] ss:$16 sps:$4 sm:$0xff]   ;;  %v2894_v48 = vld [vmem:[#allocation6 + $0x70c] ss:$16 sps:$4 sm:$0xff]  }
  0xf1   :  { %1808 = vmatpush1.bf16.msra.mxu0 %v2799_v49  ;;  %1980 = vmatpush1.bf16.msra.mxu1 %v2802_v50  ;;  %v2889_v49 = vld [vmem:[#allocation6 + $0x700] ss:$16 sps:$4 sm:$0xff]   ;;  %v2892_v50 = vld [vmem:[#allocation6 + $0x708] ss:$16 sps:$4 sm:$0xff]  }
  0xf2   :  { %1809 = vmatprep.subr.bf16.mxu0 %v2807_v51  ;;  %1981 = vmatprep.subr.bf16.mxu1 %v2810_v52  ;;  %v2897_v51 = vld [vmem:[#allocation6 + $0x724] ss:$16 sps:$4 sm:$0xff]   ;;  %v2900_v52 = vld [vmem:[#allocation6 + $0x72c] ss:$16 sps:$4 sm:$0xff]  }
  0xf5   :  { %1810 = vmatpush1.bf16.msra.mxu0 %v2805_v53  ;;  %1982 = vmatpush1.bf16.msra.mxu1 %v2808_v54  ;;  %v2895_v53 = vld [vmem:[#allocation6 + $0x720] ss:$16 sps:$4 sm:$0xff]   ;;  %v2898_v54 = vld [vmem:[#allocation6 + $0x728] ss:$16 sps:$4 sm:$0xff]  }
  0xf6   :  { %1811 = vmatprep.subr.bf16.mxu0 %v2813_v55  ;;  %1983 = vmatprep.subr.bf16.mxu1 %v2816_v56  ;;  %v2903_v55 = vld [vmem:[#allocation6 + $0x744] ss:$16 sps:$4 sm:$0xff]   ;;  %v2906_v56 = vld [vmem:[#allocation6 + $0x74c] ss:$16 sps:$4 sm:$0xff]  }
  0xf9   :  { %1812 = vmatpush1.bf16.msra.mxu0 %v2811_v57  ;;  %1984 = vmatpush1.bf16.msra.mxu1 %v2814_v58  ;;  %v2901_v57 = vld [vmem:[#allocation6 + $0x740] ss:$16 sps:$4 sm:$0xff]   ;;  %v2904_v58 = vld [vmem:[#allocation6 + $0x748] ss:$16 sps:$4 sm:$0xff]  }
  0xfa   :  { %1813 = vmatprep.subr.bf16.mxu0 %v2819_v59  ;;  %1985 = vmatprep.subr.bf16.mxu1 %v2822_v60  ;;  %v2909_v59 = vld [vmem:[#allocation6 + $0x764] ss:$16 sps:$4 sm:$0xff]   ;;  %v2912_v60 = vld [vmem:[#allocation6 + $0x76c] ss:$16 sps:$4 sm:$0xff]  }
  0xfd   :  { %1814 = vmatpush1.bf16.msra.mxu0 %v2817_v61  ;;  %1986 = vmatpush1.bf16.msra.mxu1 %v2820_v62  ;;  %v2907_v61 = vld [vmem:[#allocation6 + $0x760] ss:$16 sps:$4 sm:$0xff]   ;;  %v2910_v62 = vld [vmem:[#allocation6 + $0x768] ss:$16 sps:$4 sm:$0xff]  }
  0xfe   :  { %1815 = vmatprep.subr.bf16.mxu0 %v2825_v63  ;;  %1987 = vmatprep.subr.bf16.mxu1 %v2828_v0  ;;  %v2915_v63 = vld [vmem:[#allocation6 + $0x784] ss:$16 sps:$4 sm:$0xff]   ;;  %v2918_v0 = vld [vmem:[#allocation6 + $0x78c] ss:$16 sps:$4 sm:$0xff]  }
 0x101   :  { %1816 = vmatpush1.bf16.msra.mxu0 %v2823_v1  ;;  %1988 = vmatpush1.bf16.msra.mxu1 %v2826_v2  ;;  %v2913_v1 = vld [vmem:[#allocation6 + $0x780] ss:$16 sps:$4 sm:$0xff]   ;;  %v2916_v2 = vld [vmem:[#allocation6 + $0x788] ss:$16 sps:$4 sm:$0xff]  }
 0x102   :  { %1817 = vmatprep.subr.bf16.mxu0 %v2831_v3  ;;  %1989 = vmatprep.subr.bf16.mxu1 %v2834_v4  ;;  %v2921_v3 = vld [vmem:[#allocation6 + $0x7a4] ss:$16 sps:$4 sm:$0xff]   ;;  %v2924_v4 = vld [vmem:[#allocation6 + $0x7ac] ss:$16 sps:$4 sm:$0xff]  }
 0x105   :  { %1818 = vmatpush1.bf16.msra.mxu0 %v2829_v5  ;;  %1990 = vmatpush1.bf16.msra.mxu1 %v2832_v6  ;;  %v2919_v5 = vld [vmem:[#allocation6 + $0x7a0] ss:$16 sps:$4 sm:$0xff]   ;;  %v2922_v6 = vld [vmem:[#allocation6 + $0x7a8] ss:$16 sps:$4 sm:$0xff]  }
 0x106   :  { %1819 = vmatprep.subr.bf16.mxu0 %v2837_v7  ;;  %1991 = vmatprep.subr.bf16.mxu1 %v2840_v8  ;;  %v2927_v7 = vld [vmem:[#allocation6 + $0x7c4] ss:$16 sps:$4 sm:$0xff]   ;;  %v2930_v8 = vld [vmem:[#allocation6 + $0x7cc] ss:$16 sps:$4 sm:$0xff]  }
 0x109   :  { %1820 = vmatpush1.bf16.msra.mxu0 %v2835_v9  ;;  %1992 = vmatpush1.bf16.msra.mxu1 %v2838_v10  ;;  %v2925_v9 = vld [vmem:[#allocation6 + $0x7c0] ss:$16 sps:$4 sm:$0xff]   ;;  %v2928_v10 = vld [vmem:[#allocation6 + $0x7c8] ss:$16 sps:$4 sm:$0xff]  }
 0x10a   :  { %1832 = vmatprep.subr.bf16.mxu0 %v2843_v11  ;;  %2004 = vmatprep.subr.bf16.mxu1 %v2846_v12  ;;  %v2933_v11 = vld [vmem:[#allocation6 + $0x7e4] ss:$16 sps:$4 sm:$0xff]   ;;  %v2936_v12 = vld [vmem:[#allocation6 + $0x7ec] ss:$16 sps:$4 sm:$0xff]  }
 0x10c   :  { %1822 = vmatmul.mubr.bf16.vlgmr.msra.gmra.mrb[0].mxu0 %v2234_v13  ;;  %1994 = vmatmul.mubr.bf16.vlgmr.msra.gmra.mrb[0].mxu1 %v2234_v13  ;;  %v2931_v13 = vld [vmem:[#allocation6 + $0x7e0] ss:$16 sps:$4 sm:$0xff]  }
 0x10d   :  { %1833 = vmatpush1.bf16.msra.mxu0 %v2841_v18  ;;  %2005 = vmatpush1.bf16.msra.mxu1 %v2844_v19  ;;  %v2934_v18 = vld [vmem:[#allocation6 + $0x7e8] ss:$16 sps:$4 sm:$0xff]   ;;  %v2939_v19 = vld [vmem:[#allocation9 + $0x4] ss:$16 sps:$4 sm:$0xff]  }
 0x10e   :  { %1834 = vmatprep.subr.bf16.mxu0 %v2849_v20  ;;  %2006 = vmatprep.subr.bf16.mxu1 %v2852_v21  ;;  %v2942_v20 = vld [vmem:[#allocation9 + $0xc] ss:$16 sps:$4 sm:$0xff]   ;;  %v2236_v21 = vcombine.low %v3177_v16, %v3179_v17 }
 0x10f   :  { %1864 = vmatprep.mubr.bf16.mxu0 %v2237_v22  ;;  %2036 = vmatprep.mubr.bf16.mxu1 %v2237_v22  ;;  %v2937_v22 = vld [vmem:[#allocation9] ss:$16 sps:$4 sm:$0xff]  }
 0x111   :  { %1835 = vmatpush1.bf16.msra.mxu0 %v2847_v14  ;;  %2007 = vmatpush1.bf16.msra.mxu1 %v2850_v15  ;;  %v2940_v14 = vld [vmem:[#allocation9 + $0x8] ss:$16 sps:$4 sm:$0xff]   ;;  %v3072_v15 = vmov 0  }
 0x112   :  { %1836 = vmatprep.subr.bf16.mxu0 %v2855_v23  ;;  %2008 = vmatprep.subr.bf16.mxu1 %v2858_v24  ;;  %v2943_v23 = vld [vmem:[#allocation8] sm:$0xff]   ;;  %v83_v24 = vlaneseq }
 0x115   :  { %1837 = vmatpush1.bf16.msra.mxu0 %v2853_v25  ;;  %2009 = vmatpush1.bf16.msra.mxu1 %v2856_v26  ;;  %v84_v25 = vshrl.u32 %v83_v24, 7  ;;  %v81_v26 = vld [vmem:[%s3207_s4] sm:$0xf]  ;;  %s3032_s4 = scalar_lea.vmem %s2217_s22, 1024 }
 0x116   :  { %1838 = vmatprep.subr.bf16.mxu0 %v2861_v27  ;;  %2010 = vmatprep.subr.bf16.mxu1 %v2864_v28  ;;  %p3033_p4 = scmp.ne.s32.totalorder %s2217_s22, %s3032_s4  ;;  %p3038_p6 = scmp.lt.s32.totalorder %s3032_s4, %s3032_s4 }
 0x117   :  { %v85_v16 = vsub.s32 0, %v84_v25  ;;  %v93_v17 = vsub.s32 2, %v84_v25  ;;  %v89_v27 = vsub.s32 1, %v84_v25  ;;  %v97_v28 = vsub.s32 3, %v84_v25 }
 0x118   :  { %p3039_p7 = por %p3038_p6, %p3037_p5 }
 0x119   :  { %1839 = vmatpush1.bf16.msra.mxu0 %v2859_v29  ;;  %2011 = vmatpush1.bf16.msra.mxu1 %v2862_v30  ;;  %v86_v29 = vrot.slane %v81_v26, %v85_v16  ;;  %v94_v30 = vrot.slane %v81_v26, %v93_v17 }
 0x11a   :  { %1840 = vmatprep.subr.bf16.mxu0 %v2867_v31  ;;  %2012 = vmatprep.subr.bf16.mxu1 %v2870_v32  ;;  %v90_v31 = vrot.slane %v81_v26, %v89_v27  ;;  %v98_v32 = vrot.slane %v81_v26, %v97_v28  ;;  %p3040_p8 = pnand %p3039_p7, %p3033_p4 }
 0x11d   :  { %1841 = vmatpush1.bf16.msra.mxu0 %v2865_v33  ;;  %2013 = vmatpush1.bf16.msra.mxu1 %v2868_v34 }
 0x11e   :  { %1842 = vmatprep.subr.bf16.mxu0 %v2873_v35  ;;  %2014 = vmatprep.subr.bf16.mxu1 %v2876_v36 }
 0x121   :  { %1843 = vmatpush1.bf16.msra.mxu0 %v2871_v37  ;;  %2015 = vmatpush1.bf16.msra.mxu1 %v2874_v38 }
 0x122   :  { %1844 = vmatprep.subr.bf16.mxu0 %v2879_v39  ;;  %2016 = vmatprep.subr.bf16.mxu1 %v2882_v40 }
 0x125   :  { %1845 = vmatpush1.bf16.msra.mxu0 %v2877_v41  ;;  %2017 = vmatpush1.bf16.msra.mxu1 %v2880_v42 }
 0x126   :  { %1846 = vmatprep.subr.bf16.mxu0 %v2885_v43  ;;  %2018 = vmatprep.subr.bf16.mxu1 %v2888_v44 }
 0x129   :  { %1847 = vmatpush1.bf16.msra.mxu0 %v2883_v45  ;;  %2019 = vmatpush1.bf16.msra.mxu1 %v2886_v46 }
 0x12a   :  { %1848 = vmatprep.subr.bf16.mxu0 %v2891_v47  ;;  %2020 = vmatprep.subr.bf16.mxu1 %v2894_v48 }
 0x12d   :  { %1849 = vmatpush1.bf16.msra.mxu0 %v2889_v49  ;;  %2021 = vmatpush1.bf16.msra.mxu1 %v2892_v50 }
 0x12e   :  { %1850 = vmatprep.subr.bf16.mxu0 %v2897_v51  ;;  %2022 = vmatprep.subr.bf16.mxu1 %v2900_v52 }
 0x131   :  { %1851 = vmatpush1.bf16.msra.mxu0 %v2895_v53  ;;  %2023 = vmatpush1.bf16.msra.mxu1 %v2898_v54 }
 0x132   :  { %1852 = vmatprep.subr.bf16.mxu0 %v2903_v55  ;;  %2024 = vmatprep.subr.bf16.mxu1 %v2906_v56 }
 0x135   :  { %1853 = vmatpush1.bf16.msra.mxu0 %v2901_v57  ;;  %2025 = vmatpush1.bf16.msra.mxu1 %v2904_v58 }
 0x136   :  { %1854 = vmatprep.subr.bf16.mxu0 %v2909_v59  ;;  %2026 = vmatprep.subr.bf16.mxu1 %v2912_v60 }
 0x139   :  { %1855 = vmatpush1.bf16.msra.mxu0 %v2907_v61  ;;  %2027 = vmatpush1.bf16.msra.mxu1 %v2910_v62 }
 0x13a   :  { %1856 = vmatprep.subr.bf16.mxu0 %v2915_v63  ;;  %2028 = vmatprep.subr.bf16.mxu1 %v2918_v0 }
 0x13d   :  { %1857 = vmatpush1.bf16.msra.mxu0 %v2913_v1  ;;  %2029 = vmatpush1.bf16.msra.mxu1 %v2916_v2 }
 0x13e   :  { %1858 = vmatprep.subr.bf16.mxu0 %v2921_v3  ;;  %2030 = vmatprep.subr.bf16.mxu1 %v2924_v4 }
 0x141   :  { %1859 = vmatpush1.bf16.msra.mxu0 %v2919_v5  ;;  %2031 = vmatpush1.bf16.msra.mxu1 %v2922_v6 }
 0x142   :  { %1860 = vmatprep.subr.bf16.mxu0 %v2927_v7  ;;  %2032 = vmatprep.subr.bf16.mxu1 %v2930_v8 }
 0x145   :  { %1861 = vmatpush1.bf16.msra.mxu0 %v2925_v9  ;;  %2033 = vmatpush1.bf16.msra.mxu1 %v2928_v10 }
 0x146   :  { %1862 = vmatprep.subr.bf16.mxu0 %v2933_v11  ;;  %2034 = vmatprep.subr.bf16.mxu1 %v2936_v12 }
 0x149   :  { %1863 = vmatpush1.bf16.msra.mxu0 %v2931_v13  ;;  %2035 = vmatpush1.bf16.msra.mxu1 %v2934_v18 }
 0x14a   :  { %2109 = vmatprep.subr.bf16.mxu0 %v2939_v19  ;;  %2152 = vmatprep.subr.bf16.mxu1 %v2942_v20 }
 0x14c   :  { %1865 = vmatmul.mubr.bf16.vlgmr.msra.gmra.mrb[0].mxu0 %v2236_v21  ;;  %2037 = vmatmul.mubr.bf16.vlgmr.msra.gmra.mrb[0].mxu1 %v2236_v21 }
 0x14d   :  { %2110 = vmatpush1.bf16.msra.mxu0 %v2937_v22  ;;  %2153 = vmatpush1.bf16.msra.mxu1 %v2940_v14 }
 0x14e   :  { %2141 = vmatprep.mubr.bf16.mxu0 %v3072_v15  ;;  %2184 = vmatprep.mubr.bf16.mxu1 %v3072_v15 }
 0x158   :  { %2499 = vmatmul.mubr.msk.bf16.vlgmr.msra.gmra.mrb[0].mxu0 %vm2105_vm0, %v2943_v23  ;;  %2500 = vmatmul.mubr.msk.bf16.vlgmr.msra.gmra.mrb[0].mxu1 %vm2105_vm0, %v2943_v23 }
 0x22b   :  { %v2143_v33 = vpop.f32.mrb[0].mxu0  ;;  %v2186_v34 = vpop.f32.mrb[0].mxu1 }
 0x22c   :  { %v2501_v35 = vadd.f32 %v2143_v33, %v86_v29  ;;  %v2505_v36 = vadd.f32 %v2186_v34, %v94_v30  ;;  %v2145_v37 = vpop.f32.mrb[1].mxu0  ;;  %v2188_v38 = vpop.f32.mrb[1].mxu1 }
 0x22d   :  { %v2502_v39 = vadd.f32 %v2145_v37, %v90_v31  ;;  %v2506_v40 = vadd.f32 %v2188_v38, %v98_v32  ;;  %v2147_v41 = vpop.f32.mrb[2].mxu0  ;;  %v2190_v42 = vpop.f32.mrb[2].mxu1 }
 0x22e   :  { %2203 = vst [vmem:[#allocation11] sm:$0xff] %v2501_v35  ;;  %2205 = vst [vmem:[#allocation11 + $0x10] sm:$0xff] %v2505_v36  ;;  %v2503_v43 = vadd.f32 %v2147_v41, %v86_v29  ;;  %v2507_v44 = vadd.f32 %v2190_v42, %v94_v30  ;;  %v2149_v45 = vpop.f32.mrb[3].mxu0  ;;  %v2192_v46 = vpop.f32.mrb[3].mxu1 }
 0x22f   :  { %2204 = vst [vmem:[#allocation11 + $0x8] sm:$0xff] %v2502_v39  ;;  %2206 = vst [vmem:[#allocation11 + $0x18] sm:$0xff] %v2506_v40  ;;  %v2504_v47 = vadd.f32 %v2149_v45, %v90_v31  ;;  %v2508_v48 = vadd.f32 %v2192_v46, %v98_v32 }
 0x230   :  { %2207 = vst [vmem:[#allocation11 + $0x20] sm:$0xff] %v2503_v43  ;;  %2209 = vst [vmem:[#allocation11 + $0x30] sm:$0xff] %v2507_v44 }
 0x231   :  { %2208 = vst [vmem:[#allocation11 + $0x28] sm:$0xff] %v2504_v47  ;;  %2210 = vst [vmem:[#allocation11 + $0x38] sm:$0xff] %v2508_v48 }
 0x232   :  { %3043 = shalt.err (!%p3040_p8)
}
 0x233   :  { %s3044_s25 = scalar_lea.hbm %s3208_s5, 1024 }
 0x234   :  { %p3045_p9 = scmp.ne.s32.totalorder %s3208_s5, %s3044_s25  ;;  %p3048_p10 = scmp.lt.u32.totalorder %s3044_s25, %s3208_s5 }
 0x236   :  { %p3050_p11 = pnand %p3048_p10, %p3045_p9 }
 0x238   :  { %3053 = shalt.err (!%p3050_p11)
}
 0x239   :  { %2222 = dma.vmem_to_hbm [thread:$0]  %s2217_s22, 1024, %s3208_s5, [#allocation5], %s3066_s1, %s3066_s1, %s3067_s17  }
 0x23a   :  { %3060 = dma.done.wait [#allocation5], 1024  }
 0x23b   :  { %3061 = vsyncadd [#allocation5], 4294966272 }
 0x23c   :  { %2226 = vsyncpa [#allocation4], 1 }
 0x23d   :  { %2227 = vsyncpa [#allocation7], 1 }
 0x23e   :  { %2228 = vsyncpa [#allocation10], 1 }
 0x23f   :  { %2229 = vsyncpa [#allocation5], 1 }

</bundles_post_ra>
